<compile_context>
chip_gen: v7x
topology: tpu7x:2x2x1
jax: 0.10.0
libtpu: 0.0.40
codegen_flags: <defaults>
</compile_context>

<pallas_src>
import functools

import jax
import jax.numpy as jnp
from jax import lax
from jax.experimental import pallas as pl
from jax.experimental.pallas import tpu as pltpu

LANES = 128                       # lane width of a vreg
TD_PREF = 1024                    # preferred 128-wide units per grid step
VMEM_BUDGET = 12 * 1024 * 1024    # 2 inputs x 2 pipeline buffers must fit here


def _sublane_multiple(dtype) -> int:
    itemsize = jnp.dtype(dtype).itemsize
    return max(8, 32 // max(itemsize, 1))   # 8 (f32), 16 (bf16), 32 (int8/fp8)


def _cdiv(a, b):
    return -(-a // b)


def _round_up(x, m):
    return _cdiv(x, m) * m


def _pair_metric_kernel(x_ref, y_ref, out_ref, *acc_refs,
                        norm_flag: bool, steps_per_core: int,
                        block_dim1: int, valid_dim1: int, first_mask):
    """Accumulate lane-partial sums of the streamed blocks.

    Block is either (B, R, 128) [aligned path] or (B, C) [unaligned path];
    axis 1 is the tiled axis in both cases.  `first_mask` is the first logical
    block index whose axis-1 positions can exceed `valid_dim1` (None if no
    masking is ever required).
    """
    c = pl.program_id(0)
    k = pl.program_id(1)

    @pl.when(k == 0)
    def _():
        for a in acc_refs:
            a[...] = jnp.zeros_like(a)

    x_raw = x_ref[...]
    y_raw = y_ref[...]

    def _lane_partial(v):
        if v.ndim == 3:                                  # (B, R, 128) -> (B, 128)
            return jnp.sum(v, axis=1)
        return jnp.sum(v, axis=1, keepdims=True)         # (B, C) -> (B, 1)

    def _accumulate(x, y):
        if norm_flag:
            # ||x/||x|| - y/||y||||^2 == 2 - 2 xy / sqrt(xx * yy): the plain
            # difference path is dead in this mode, so it is not computed.
            xx_acc, yy_acc, xy_acc = acc_refs
            xx_acc[...] += _lane_partial(x * x)
            yy_acc[...] += _lane_partial(y * y)
            xy_acc[...] += _lane_partial(x * y)
        else:
            (sq_acc,) = acc_refs
            d = x - y
            sq_acc[...] += _lane_partial(d * d)

    if first_mask is None:
        _accumulate(x_raw.astype(jnp.float32), y_raw.astype(jnp.float32))
    else:
        logical = c * steps_per_core + k
        needs_mask = logical >= first_mask

        @pl.when(jnp.logical_not(needs_mask))
        def _():
            # Fast path: no iota / compare / select work on full blocks.
            _accumulate(x_raw.astype(jnp.float32), y_raw.astype(jnp.float32))

        @pl.when(needs_mask)
        def _():
            pos = lax.broadcasted_iota(jnp.int32, x_raw.shape, dimension=1)
            valid = (pos + logical * block_dim1) < valid_dim1
            xm = jnp.where(valid, x_raw.astype(jnp.float32), 0.0)
            ym = jnp.where(valid, y_raw.astype(jnp.float32), 0.0)
            _accumulate(xm, ym)

    @pl.when(k == steps_per_core - 1)
    def _():
        for i, a in enumerate(acc_refs):
            out_ref[0, i] = a[...]


def pair_metric(inp, tgt, *, average: bool = True, norm_flag: bool = False):
    """Pallas implementation of Pair_metric.forward.  Returns an f32 scalar."""
    batch = inp.shape[0]
    x2d = jnp.reshape(inp, (batch, -1))          # native dtype, no f32 upcast
    y2d = jnp.reshape(tgt, (batch, -1))
    d = x2d.shape[1]
    itemsize = max(jnp.dtype(x2d.dtype).itemsize,
                   jnp.dtype(y2d.dtype).itemsize)

    n_acc = 3 if norm_flag else 1
    aligned = (d % LANES) == 0

    if aligned:
        # Zero-copy reshape to a sublane/lane-dense (B, rows, 128) layout.
        n_units = d // LANES
        mult = max(_sublane_multiple(x2d.dtype), _sublane_multiple(y2d.dtype))
        x_in = jnp.reshape(x2d, (batch, n_units, LANES))
        y_in = jnp.reshape(y2d, (batch, n_units, LANES))
        acc_w = LANES
    else:
        # No jnp.pad copy: stream the unpadded (B, D) array with 128-aligned
        # column tiles and mask the ragged tail in-kernel.
        n_units = _cdiv(d, LANES)
        mult = 1
        x_in, y_in = x2d, y2d
        acc_w = 1

    # Tile size along axis 1, in 128-element units; cap so that
    # 2 inputs x 2 pipeline buffers stay inside the VMEM budget.
    unit_bytes = batch * LANES * itemsize
    cap_units = max(mult, (VMEM_BUDGET // (4 * unit_bytes) // mult) * mult)
    pref_units = min(TD_PREF, cap_units)

    if n_units <= pref_units:
        if n_units >= 2 * mult and n_units >= 2:
            # Split into (at least) two blocks so both TensorCores get work.
            tile_units = _round_up(_cdiv(n_units, 2), mult)
        else:
            tile_units = n_units
    else:
        tile_units = pref_units

    if aligned:
        block_shape = (batch, tile_units, LANES)
        block_dim1 = tile_units
        valid_dim1 = n_units
        n_blocks = _cdiv(n_units, tile_units)
        ragged = (n_units % tile_units) != 0
    else:
        tile_cols = tile_units * LANES
        if tile_cols >= d:
            tile_cols = d                     # full-extent block: always legal
        block_shape = (batch, tile_cols)
        block_dim1 = tile_cols
        valid_dim1 = d
        n_blocks = _cdiv(d, tile_cols)
        ragged = (d % tile_cols) != 0

    n_cores = 2 if n_blocks >= 2 else 1       # use both TCs on v7x
    spc = _cdiv(n_blocks, n_cores)            # inner (serial) steps per core
    clones = (n_cores * spc) > n_blocks       # clamped duplicate blocks exist

    if ragged:
        first_mask = n_blocks - 1
    elif clones:
        first_mask = n_blocks
    else:
        first_mask = None

    def _in_map(c, k, _spc=spc, _n=n_blocks, _aligned=aligned):
        blk = jnp.minimum(c * _spc + k, _n - 1)   # clamp clone blocks in-range
        if _aligned:
            return (0, blk, 0)
        return (0, blk)

    kernel = functools.partial(
        _pair_metric_kernel,
        norm_flag=norm_flag, steps_per_core=spc,
        block_dim1=block_dim1, valid_dim1=valid_dim1, first_mask=first_mask)

    parts = pl.pallas_call(
        kernel,
        out_shape=jax.ShapeDtypeStruct((n_cores, n_acc, batch, acc_w),
                                       jnp.float32),
        grid_spec=pltpu.PrefetchScalarGridSpec(
            num_scalar_prefetch=0,
            grid=(n_cores, spc),
            in_specs=[
                pl.BlockSpec(block_shape, _in_map),
                pl.BlockSpec(block_shape, _in_map),
            ],
            out_specs=pl.BlockSpec((1, n_acc, batch, acc_w),
                                   lambda c, k: (c, 0, 0, 0)),
            scratch_shapes=[pltpu.VMEM((batch, acc_w), jnp.float32)
                            for _ in range(n_acc)],
        ),
        compiler_params=pltpu.CompilerParams(
            dimension_semantics=("parallel", "arbitrary"),
            vmem_limit_bytes=32 * 1024 * 1024),
    )(x_in, y_in)

    # Tiny JAX epilogue: combine per-core lane partials -> per-row values.
    sums = jnp.sum(parts, axis=(0, 3))                # (n_acc, batch)
    if norm_flag:
        xx, yy, xy = sums[0], sums[1], sums[2]
        per_row = 2.0 - 2.0 * xy * lax.rsqrt(xx * yy)  # (batch,)
    else:
        per_row = sums[0]
    if average:
        return jnp.mean(per_row)
    return jnp.sum(per_row)


def _reference(inp, tgt, *, average=True, norm_flag=False):
    batch = inp.shape[0]
    x = jnp.reshape(inp, (batch, -1)).astype(jnp.float32)
    y = jnp.reshape(tgt, (batch, -1)).astype(jnp.float32)
    if norm_flag:
        x = x / jnp.linalg.norm(x, ord=2, axis=1, keepdims=True)
        y = y / jnp.linalg.norm(y, ord=2, axis=1, keepdims=True)
    if average:
        return jnp.mean(jnp.sum((x - y) ** 2, axis=1), axis=0)
    return jnp.sum((x - y) ** 2)


if __name__ == "__main__":
    key = jax.random.PRNGKey(0)
    k1, k2, k3, k4, k5, k6, k7, k8 = jax.random.split(key, 8)

    ok = True

    def _check(x, t, average, norm_flag, rtol, atol):
        global ok
        got = jax.block_until_ready(
            pair_metric(x, t, average=average, norm_flag=norm_flag))
        want = _reference(x, t, average=average, norm_flag=norm_flag)
        if not jnp.allclose(got, want, rtol=rtol, atol=atol):
            ok = False

    # Small NCHW inputs (single-block, single-core path).
    x = jax.random.normal(k1, (2, 4, 16, 16), dtype=jnp.float32)
    t = jax.random.normal(k2, (2, 4, 16, 16), dtype=jnp.float32)
    for average in (True, False):
        for norm_flag in (False, True):
            _check(x, t, average, norm_flag, 1e-4, 1e-4)

    # Aligned D, two-core split with a ragged (masked) last block.
    xl = jax.random.normal(k3, (2, 4, 128, 129), dtype=jnp.float32)
    tl = jax.random.normal(k4, (2, 4, 128, 129), dtype=jnp.float32)
    for norm_flag in (False, True):
        _check(xl, tl, True, norm_flag, 1e-3, 1e-3)

    # Unaligned D (D % 128 != 0): no wrapper-side padding; in-kernel tail mask.
    xu = jax.random.normal(k5, (2, 3, 17, 13), dtype=jnp.float32)
    tu = jax.random.normal(k6, (2, 3, 17, 13), dtype=jnp.float32)
    for norm_flag in (False, True):
        for average in (True, False):
            _check(xu, tu, average, norm_flag, 1e-4, 1e-4)

    # Larger aligned case with multiple serial steps per core (no masking).
    xm = jax.random.normal(k7, (2, 32, 128, 128), dtype=jnp.float32)
    tm = jax.random.normal(k8, (2, 32, 128, 128), dtype=jnp.float32)
    for norm_flag in (False, True):
        _check(xm, tm, True, norm_flag, 1e-3, 1e-3)

    # bf16 inputs stream in native dtype; kernel accumulates in f32.
    xb = x.astype(jnp.bfloat16)
    tb = t.astype(jnp.bfloat16)
    _check(xb, tb, True, True, 2e-2, 2e-2)
    _check(xb, tb, True, False, 2e-2, 2e-2)

    if ok:
        print("KERNEL_OK")
    else:
        print("MISMATCH")
</pallas_src>

<mosaic_0001>
module attributes {stable_mosaic.version = 11 : i64} {
  func.func @_pair_metric_kernel(%arg0: i32, %arg1: i32, %arg2: memref<2x8x128xf32, #tpu.memory_space<vmem>>, %arg3: memref<2x8x128xf32, #tpu.memory_space<vmem>>, %arg4: memref<1x1x2x128xf32, #tpu.memory_space<vmem>>, %arg5: memref<2x128xf32, #tpu.memory_space<vmem>>) attributes {dimension_semantics = [#tpu.dimension_semantics<parallel>, #tpu.dimension_semantics<arbitrary>], iteration_bounds = array<i64: 1, 1>, scalar_prefetch = 0 : i64, scratch_operands = 1 : i64, tpu.core_type = #tpu.core_type<tc>, window_params = [{transform_indices = @transform_0, window_bounds = array<i64: 2, 8, 128>}, {transform_indices = @transform_1, window_bounds = array<i64: 2, 8, 128>}, {transform_indices = @transform_2, window_bounds = array<i64: 1, 1, 2, 128>}]} {
    %c0_i32 = arith.constant 0 : i32
    %0 = arith.cmpi eq, %arg1, %c0_i32 : i32
    %1 = arith.extui %0 : i1 to i32
    %c0_i32_0 = arith.constant 0 : i32
    %2 = arith.cmpi ne, %1, %c0_i32_0 : i32
    scf.if %2 {
      %cst_12 = arith.constant 0.000000e+00 : f32
      %14 = vector.broadcast %cst_12 : f32 to vector<2x128xf32>
      %c0_13 = arith.constant 0 : index
      %c0_14 = arith.constant 0 : index
      %15 = vector.load %arg5[%c0_13, %c0_14] : memref<2x128xf32, #tpu.memory_space<vmem>>, vector<2x128xf32>
      tpu.vector_store %arg5[%c0_13, %c0_14], %14 {strides = array<i32>} : memref<2x128xf32, #tpu.memory_space<vmem>>, vector<2x128xf32>,
    } else {
    }
    %c0 = arith.constant 0 : index
    %c0_1 = arith.constant 0 : index
    %c0_2 = arith.constant 0 : index
    %3 = vector.load %arg2[%c0, %c0_1, %c0_2] : memref<2x8x128xf32, #tpu.memory_space<vmem>>, vector<2x8x128xf32>
    %c0_3 = arith.constant 0 : index
    %c0_4 = arith.constant 0 : index
    %c0_5 = arith.constant 0 : index
    %4 = vector.load %arg3[%c0_3, %c0_4, %c0_5] : memref<2x8x128xf32, #tpu.memory_space<vmem>>, vector<2x8x128xf32>
    %5 = arith.subf %3, %4 : vector<2x8x128xf32>
    %c0_6 = arith.constant 0 : index
    %c0_7 = arith.constant 0 : index
    %6 = vector.load %arg5[%c0_6, %c0_7] : memref<2x128xf32, #tpu.memory_space<vmem>>, vector<2x128xf32>
    %7 = arith.mulf %5, %5 : vector<2x8x128xf32>
    %cst = arith.constant dense<0.000000e+00> : vector<2x128xf32>
    %8 = vector.multi_reduction <add>, %7, %cst [1] : vector<2x8x128xf32> to vector<2x128xf32>
    %9 = arith.addf %6, %8 : vector<2x128xf32>
    %c0_8 = arith.constant 0 : index
    %c0_9 = arith.constant 0 : index
    %10 = vector.load %arg5[%c0_8, %c0_9] : memref<2x128xf32, #tpu.memory_space<vmem>>, vector<2x128xf32>
    tpu.vector_store %arg5[%c0_8, %c0_9], %9 {strides = array<i32>} : memref<2x128xf32, #tpu.memory_space<vmem>>, vector<2x128xf32>,
    %c0_i32_10 = arith.constant 0 : i32
    %11 = arith.cmpi eq, %arg1, %c0_i32_10 : i32
    %12 = arith.extui %11 : i1 to i32
    %c0_i32_11 = arith.constant 0 : i32
    %13 = arith.cmpi ne, %12, %c0_i32_11 : i32
    scf.if %13 {
      %c0_12 = arith.constant 0 : index
      %c0_13 = arith.constant 0 : index
      %14 = vector.load %arg5[%c0_12, %c0_13] : memref<2x128xf32, #tpu.memory_space<vmem>>, vector<2x128xf32>
      %c0_14 = arith.constant 0 : index
      %c0_15 = arith.constant 0 : index
      %c0_16 = arith.constant 0 : index
      %c0_17 = arith.constant 0 : index
      %15 = vector.load %arg4[%c0_14, %c0_15, %c0_16, %c0_17] : memref<1x1x2x128xf32, #tpu.memory_space<vmem>>, vector<1x1x2x128xf32>
      %16 = vector.shape_cast %15 : vector<1x1x2x128xf32> to vector<2x128xf32>
      %17 = vector.shape_cast %14 : vector<2x128xf32> to vector<1x1x2x128xf32>
      tpu.vector_store %arg4[%c0_14, %c0_15, %c0_16, %c0_17], %17 {strides = array<i32>} : memref<1x1x2x128xf32, #tpu.memory_space<vmem>>, vector<1x1x2x128xf32>,
    } else {
    }
    return
  }
  func.func @transform_0(%arg0: i32, %arg1: i32) -> (i32, i32, i32) {
    %c1_i32 = arith.constant 1 : i32
    %0 = arith.muli %arg0, %c1_i32 : i32
    %1 = arith.addi %0, %arg1 : i32
    %c0_i32 = arith.constant 0 : i32
    %2 = arith.minsi %1, %c0_i32 : i32
    %c0_i32_0 = arith.constant 0 : i32
    %c0_i32_1 = arith.constant 0 : i32
    %c0_i32_2 = arith.constant 0 : i32
    return %c0_i32_0, %2, %c0_i32_1 : i32, i32, i32
  }
  func.func @transform_1(%arg0: i32, %arg1: i32) -> (i32, i32, i32) {
    %c1_i32 = arith.constant 1 : i32
    %0 = arith.muli %arg0, %c1_i32 : i32
    %1 = arith.addi %0, %arg1 : i32
    %c0_i32 = arith.constant 0 : i32
    %2 = arith.minsi %1, %c0_i32 : i32
    %c0_i32_0 = arith.constant 0 : i32
    %c0_i32_1 = arith.constant 0 : i32
    %c0_i32_2 = arith.constant 0 : i32
    return %c0_i32_0, %2, %c0_i32_1 : i32, i32, i32
  }
  func.func @transform_2(%arg0: i32, %arg1: i32) -> (i32, i32, i32, i32) {
    %c0_i32 = arith.constant 0 : i32
    %c0_i32_0 = arith.constant 0 : i32
    %c0_i32_1 = arith.constant 0 : i32
    %c0_i32_2 = arith.constant 0 : i32
    return %arg0, %c0_i32, %c0_i32_0, %c0_i32_1 : i32, i32, i32, i32
  }
}

</mosaic_0001>

<bundles_post_ra>
// kernel: tpu_custom_call.1
= control target key start
LH: loop header
LB: loop body
LE: loop exit
PB: predicated region body
PF: predicated region fallthrough
CT: control target
= control target key end

     0   :  { %7 = vsyncpa [#allocation4], 0  ;;  %s249_s0 = inlined_call_operand.hbm [shape: f32[2,8,128], index: 0, kind: input, shape index: {}]   ;;  %s250_s1 = inlined_call_operand.hbm [shape: f32[2,8,128], index: 1, kind: input, shape index: {}]   ;;  %s251_s2 = inlined_call_operand.hbm [shape: f32[1,1,2,128], index: 2, kind: output, shape index: {}]  }
   0x1   :  { %8 = vsyncpa [#allocation7], 0 }
   0x2   :  { %9 = vsyncpa [#allocation5], 0  ;;  %s192_s9 = smov [#allocation3]   ;;  %s120_s13 = scalar_lea.hbm %s249_s0, 256 }
   0x3   :  { %s20_s10 = sshll.u32 %s192_s9, 4  ;;  %p121_p0 = scmp.ne.s32.totalorder %s249_s0, %s120_s13  ;;  %s21_s10 = int_to_ptr.vmem [resolvable:$true] %s20_s10 }
   0x4   :  { %p124_p1 = scmp.lt.u32.totalorder %s120_s13, %s249_s0 }
   0x6   :  { %p126_p2 = pnand %p124_p1, %p121_p0 }
   0x8   :  { %129 = shalt.err (!%p126_p2)
}
   0x9   :  { %s130_s18 = scalar_lea.vmem %s21_s10, 256  ;;  %p135_p4 = scmp.lt.s32.totalorder %s21_s10, %s21_s10 }
   0xa   :  { %p131_p3 = scmp.ne.s32.totalorder %s21_s10, %s130_s18  ;;  %p136_p5 = scmp.lt.s32.totalorder %s130_s18, %s130_s18 }
   0xc   :  { %p137_p6 = por %p136_p5, %p135_p4 }
   0xe   :  { %p138_p7 = pnand %p137_p6, %p131_p3 }
  0x10   :  { %141 = shalt.err (!%p138_p7)
}
  0x11   :  { %s193_s19 = smov 128   ;;  %s194_s20 = smov 8  }
  0x12   :  { %26 = dma.hbm_to_vmem [thread:$0]  %s249_s0, 256, %s21_s10, [#allocation4], %s193_s19, %s193_s19, %s194_s20  }
  0x13   :  { %s195_s23 = smov [#allocation6]   ;;  %s142_s27 = scalar_lea.hbm %s250_s1, 256 }
  0x14   :  { %s37_s24 = sshll.u32 %s195_s23, 4  ;;  %p143_p8 = scmp.ne.s32.totalorder %s250_s1, %s142_s27  ;;  %s38_s24 = int_to_ptr.vmem [resolvable:$true] %s37_s24 }
  0x15   :  { %p146_p9 = scmp.lt.u32.totalorder %s142_s27, %s250_s1 }
  0x17   :  { %p148_p10 = pnand %p146_p9, %p143_p8 }
  0x19   :  { %151 = shalt.err (!%p148_p10)
}
  0x1a   :  { %s152_s4 = scalar_lea.vmem %s38_s24, 256  ;;  %p157_p12 = scmp.lt.s32.totalorder %s38_s24, %s38_s24 }
  0x1b   :  { %p153_p11 = scmp.ne.s32.totalorder %s38_s24, %s152_s4  ;;  %p158_p13 = scmp.lt.s32.totalorder %s152_s4, %s152_s4 }
  0x1d   :  { %p159_p0 = por %p158_p13, %p157_p12 }
  0x1f   :  { %p160_p1 = pnand %p159_p0, %p153_p11 }
  0x21   :  { %163 = shalt.err (!%p160_p1)
}
  0x22   :  { %43 = dma.hbm_to_vmem [thread:$0]  %s250_s1, 256, %s38_s24, [#allocation7], %s193_s19, %s193_s19, %s194_s20  }
  0x23   :  { %186 = dma.done.wait [#allocation4], 256  }
  0x24   :  { %187 = vsyncadd [#allocation4], 4294967040 }
  0x25   :  { %188 = dma.done.wait [#allocation7], 256  }
  0x26   :  { %189 = vsyncadd [#allocation7], 4294967040  ;;  %v196_v0 = vmov 0.0   ;;  %v61_v1 = vld [vmem:[#allocation3] sm:$0xff]  ;;  %v62_v2 = vld [vmem:[#allocation3 + $0x8] sm:$0xff]  ;;  %vm84_vm0 = vcmask 1041409  }
  0x27   :  { %60 = vst [vmem:[#allocation2] sm:$0x3] %v196_v0  ;;  %v63_v3 = vld [vmem:[#allocation6] sm:$0xff]  ;;  %v64_v4 = vld [vmem:[#allocation6 + $0x8] sm:$0xff]  ;;  %s197_s1 = smov [#allocation8]  }
  0x28   :  { %v65_v5 = vsub.f32 %v61_v1, %v63_v3  ;;  %v66_v6 = vsub.f32 %v62_v2, %v64_v4  ;;  %s100_s6 = sshll.u32 %s197_s1, 4  ;;  %s101_s6 = int_to_ptr.vmem [resolvable:$true] %s100_s6 }
  0x29   :  { %s164_s7 = scalar_lea.vmem %s101_s6, 32  ;;  %p169_p3 = scmp.lt.s32.totalorder %s101_s6, %s101_s6 }
  0x2a   :  { %v68_v7 = vmul.f32 %v65_v5, %v65_v5  ;;  %v69_v8 = vmul.f32 %v66_v6, %v66_v6  ;;  %p165_p2 = scmp.ne.s32.totalorder %s101_s6, %s164_s7  ;;  %p170_p4 = scmp.lt.s32.totalorder %s164_s7, %s164_s7 }
  0x2c   :  { %v70_v9 = vrot.slane %v68_v7, 4  ;;  %v76_v10 = vrot.slane %v69_v8, 4  ;;  %p171_p5 = por %p170_p4, %p169_p3 }
  0x2e   :  { %v71_v11 = vadd.f32 %v70_v9, %v68_v7  ;;  %v77_v12 = vadd.f32 %v76_v10, %v69_v8  ;;  %v67_v20 = vld [vmem:[#allocation2] sm:$0x3]  ;;  %p172_p6 = pnand %p171_p5, %p165_p2 }
  0x30   :  { %v72_v13 = vrot.slane %v71_v11, 2  ;;  %v78_v14 = vrot.slane %v77_v12, 2 }
  0x32   :  { %v73_v15 = vadd.f32 %v72_v13, %v71_v11  ;;  %v79_v16 = vadd.f32 %v78_v14, %v77_v12 }
  0x34   :  { %v74_v17 = vrot.slane %v73_v15, 1  ;;  %v80_v18 = vrot.slane %v79_v16, 1 }
  0x36   :  { %v75_v19 = vadd.f32 %v74_v17, %v73_v15  ;;  %v81_v21 = vadd.f32 %v80_v18, %v79_v16 }
  0x38   :  { %v85_v22 = vsel %vm84_vm0, %v81_v21, %v75_v19 }
  0x39   :  { %v87_v23 = vadd.f32 %v85_v22, %v67_v20 }
  0x3b   :  { %88 = vst [vmem:[#allocation2] sm:$0x3] %v87_v23 }
  0x42   :  { %v92_v24 = vld [vmem:[#allocation2] sm:$0x3] }
  0x43   :  { %93 = vst [vmem:[#allocation8] sm:$0x3] %v92_v24 }
  0x44   :  { %175 = shalt.err (!%p172_p6)
}
  0x45   :  { %s176_s10 = scalar_lea.hbm %s251_s2, 32 }
  0x46   :  { %p177_p7 = scmp.ne.s32.totalorder %s251_s2, %s176_s10  ;;  %p180_p8 = scmp.lt.u32.totalorder %s176_s10, %s251_s2 }
  0x48   :  { %p182_p9 = pnand %p180_p8, %p177_p7 }
  0x4a   :  { %185 = shalt.err (!%p182_p9)
}
  0x4b   :  { %103 = dma.vmem_to_hbm [thread:$0]  %s101_s6, 32, %s251_s2, [#allocation5]  }
  0x4c   :  { %190 = dma.done.wait [#allocation5], 32  }
  0x4d   :  { %191 = vsyncadd [#allocation5], 4294967264 }
  0x4e   :  { %107 = vsyncpa [#allocation4], 1 }
  0x4f   :  { %108 = vsyncpa [#allocation7], 1 }
  0x50   :  { %109 = vsyncpa [#allocation5], 1 }

</bundles_post_ra>
